<compile_context>
chip_gen: v7x
topology: tpu7x:2x2x1
jax: 0.10.0
libtpu: 0.0.40
codegen_flags: <defaults>
</compile_context>

<pallas_src>
import functools

import jax
import jax.numpy as jnp
from jax import lax
from jax.experimental import pallas as pl
from jax.experimental.pallas import tpu as pltpu

BN_EPS = 1e-5      # torch.nn.BatchNorm1d default eps
NORM_EPS = 1e-12   # F.normalize default eps


def _ssl_barlow_kernel(hcat_ref, w1_ref, g1_ref, b1_ref, w2_ref, loss_ref, *,
                       lambd):
    two_n = hcat_ref.shape[0]
    n = two_n // 2
    p = w2_ref.shape[1]
    inv_n = 1.0 / n

    def l2_normalize(x):
        # F.normalize(x, p=2, dim=1): x / max(||x||_2, eps) == x * rsqrt(max(ss, eps^2))
        ss = jnp.sum(x * x, axis=1, keepdims=True)
        return x * lax.rsqrt(jnp.maximum(ss, NORM_EPS * NORM_EPS))

    def bn_stats(x):
        # BatchNorm1d in training mode: biased batch variance.
        mean = jnp.mean(x, axis=0, keepdims=True)
        d = x - mean
        var = jnp.mean(d * d, axis=0, keepdims=True)
        return d, var

    def bn_affine(x):
        d, var = bn_stats(x)
        scale = g1_ref[...] * lax.rsqrt(var + BN_EPS)   # fold gamma into (1,H) scale
        return d * scale + b1_ref[...]

    def bn_plain(x):
        d, var = bn_stats(x)
        return d * lax.rsqrt(var + BN_EPS)

    # --- fused projector over the stacked (2N, D) input ---------------------
    h = l2_normalize(hcat_ref[...])                                   # (2N, D)
    x = jnp.dot(h, w1_ref[...], preferred_element_type=jnp.float32)   # (2N, H)

    # Projector BN stats per forward call => per N-row half (matches PyTorch).
    y1 = jnp.maximum(bn_affine(x[:n]), 0.0)
    y2 = jnp.maximum(bn_affine(x[n:]), 0.0)
    y = jnp.concatenate([y1, y2], axis=0)                             # (2N, H)

    z = jnp.dot(y, w2_ref[...], preferred_element_type=jnp.float32)   # (2N, P)

    # Affine-free BatchNorm1d (again per half), then cross-correlation matrix.
    z1b = bn_plain(z[:n])
    z2b = bn_plain(z[n:])

    # c = z1b.T @ z2b without materializing a transpose: contract batch axes.
    c = lax.dot_general(z1b, z2b,
                        dimension_numbers=(((0,), (0,)), ((), ())),
                        preferred_element_type=jnp.float32)           # (P, P)
    c = c * inv_n                                                     # c.div_(N)

    # Single-pass diag/off-diag reduction:
    #   on_diag + lambd*off_diag = sum_diag((c-1)^2 - lambd*c^2) + lambd*sum_all(c^2)
    eye = (lax.broadcasted_iota(jnp.int32, (p, p), 0) ==
           lax.broadcasted_iota(jnp.int32, (p, p), 1))
    csq = c * c
    cm1 = c - 1.0
    s_all = jnp.sum(csq)
    s_diag = jnp.sum(jnp.where(eye, cm1 * cm1 - lambd * csq, 0.0))

    loss_ref[0] = s_diag + lambd * s_all


def ssl_barlow_loss(h1, h2, w1, g1, b1, w2, *, lambd):
    # Stack the two views so the projector runs as one pair of matmuls.
    hcat = jnp.concatenate([h1, h2], axis=0)                          # (2N, D)
    vmem = pl.BlockSpec(memory_space=pltpu.MemorySpace.VMEM)
    smem = pl.BlockSpec(memory_space=pltpu.MemorySpace.SMEM)
    loss = pl.pallas_call(
        functools.partial(_ssl_barlow_kernel, lambd=lambd),
        out_shape=jax.ShapeDtypeStruct((1,), jnp.float32),
        in_specs=[vmem] * 5,
        out_specs=smem,
    )(hcat, w1, g1, b1, w2)
    return loss[0]


def ssl_barlow_loss_ref(h1, h2, w1, g1, b1, w2, *, lambd):
    """Pure-JAX reference (mirrors the PyTorch forward)."""
    def l2n(x):
        return x / jnp.maximum(jnp.linalg.norm(x, axis=1, keepdims=True), NORM_EPS)

    def bn(x, gamma=None, beta=None):
        mean = x.mean(0, keepdims=True)
        var = ((x - mean) ** 2).mean(0, keepdims=True)
        y = (x - mean) / jnp.sqrt(var + BN_EPS)
        if gamma is not None:
            y = y * gamma + beta
        return y

    def proj(h):
        x = jnp.maximum(bn(h @ w1, g1, b1), 0.0)
        return x @ w2

    z1 = proj(l2n(h1))
    z2 = proj(l2n(h2))
    c = (bn(z1).T @ bn(z2)) / z1.shape[0]
    on_diag = jnp.sum((jnp.diag(c) - 1.0) ** 2)
    off_diag = jnp.sum(c ** 2) - jnp.sum(jnp.diag(c) ** 2)
    return on_diag + lambd * off_diag


if __name__ == "__main__":
    # Small shapes consistent with the module's forward.
    N = 8           # batch
    D = 32          # code_embed_dim
    H = 64          # projector hidden
    P = 64          # projector output
    LAMBD = 0.005   # barlow_lambd

    key = jax.random.PRNGKey(0)
    k_h1, k_h2, k_w1, k_w2 = jax.random.split(key, 4)

    h1 = jax.random.normal(k_h1, (N, D), dtype=jnp.float32)
    h2 = jax.random.normal(k_h2, (N, D), dtype=jnp.float32)

    # Deterministic synthetic parameters (projector weights stored (in, out)).
    w1 = jax.random.normal(k_w1, (D, H), dtype=jnp.float32) / jnp.sqrt(D)
    g1 = jnp.ones((1, H), dtype=jnp.float32)    # BatchNorm1d default gamma
    b1 = jnp.zeros((1, H), dtype=jnp.float32)   # BatchNorm1d default beta
    w2 = jax.random.normal(k_w2, (H, P), dtype=jnp.float32) / jnp.sqrt(H)

    loss = ssl_barlow_loss(h1, h2, w1, g1, b1, w2, lambd=LAMBD)
    loss = jax.block_until_ready(loss)

    ref = ssl_barlow_loss_ref(h1, h2, w1, g1, b1, w2, lambd=LAMBD)
    assert jnp.allclose(loss, ref, rtol=1e-3, atol=1e-3), (loss, ref)

    # TODO(synk): 'simclr'/'supcon' and 'noise_contrast' branches (which rely on
    # torch.randperm shuffles / SupConLoss) are not exercised by this barlow config.
    print("KERNEL_OK")
</pallas_src>

<mosaic_0001>
module attributes {stable_mosaic.version = 11 : i64} {
  func.func @_ssl_barlow_kernel(%arg0: memref<16x32xf32, #tpu.memory_space<vmem>>, %arg1: memref<32x64xf32, #tpu.memory_space<vmem>>, %arg2: memref<1x64xf32, #tpu.memory_space<vmem>>, %arg3: memref<1x64xf32, #tpu.memory_space<vmem>>, %arg4: memref<64x64xf32, #tpu.memory_space<vmem>>, %arg5: memref<1xf32, #tpu.memory_space<smem>>) attributes {dimension_semantics = [], scalar_prefetch = 0 : i64, scratch_operands = 0 : i64, tpu.core_type = #tpu.core_type<tc>} {
    %c0 = arith.constant 0 : index
    %c0_0 = arith.constant 0 : index
    %0 = vector.load %arg0[%c0, %c0_0] : memref<16x32xf32, #tpu.memory_space<vmem>>, vector<16x32xf32>
    %1 = arith.mulf %0, %0 : vector<16x32xf32>
    %cst = arith.constant dense<0.000000e+00> : vector<16xf32>
    %2 = vector.multi_reduction <add>, %1, %cst [1] : vector<16x32xf32> to vector<16xf32>
    %3 = vector.shape_cast %2 : vector<16xf32> to vector<16x1xf32>
    %cst_1 = arith.constant 1.000000e-24 : f32
    %4 = vector.broadcast %cst_1 : f32 to vector<16x1xf32>
    %5 = arith.maximumf %3, %4 : vector<16x1xf32>
    %6 = math.rsqrt %5 : vector<16x1xf32>
    %7 = vector.broadcast %6 : vector<16x1xf32> to vector<16x32xf32>
    %8 = arith.mulf %0, %7 : vector<16x32xf32>
    %c0_2 = arith.constant 0 : index
    %c0_3 = arith.constant 0 : index
    %9 = vector.load %arg1[%c0_2, %c0_3] : memref<32x64xf32, #tpu.memory_space<vmem>>, vector<32x64xf32>
    %cst_4 = arith.constant dense<0.000000e+00> : vector<16x64xf32>
    %10 = tpu.matmul %8, %9, %cst_4 {dimension_numbers = #tpu.dot_dimension_numbers<[1], [0], [0], [1], [0, 0, 1, 1], [], []>} : vector<16x32xf32>, vector<32x64xf32>, vector<16x64xf32> -> vector<16x64xf32>
    %11 = vector.extract_strided_slice %10 {offsets = [0, 0], sizes = [8, 64], strides = [1, 1]} : vector<16x64xf32> to vector<8x64xf32>
    %cst_5 = arith.constant dense<0.000000e+00> : vector<64xf32>
    %12 = vector.multi_reduction <add>, %11, %cst_5 [0] : vector<8x64xf32> to vector<64xf32>
    %13 = vector.shape_cast %12 : vector<64xf32> to vector<1x64xf32>
    %cst_6 = arith.constant 8.000000e+00 : f32
    %14 = vector.broadcast %cst_6 : f32 to vector<1x64xf32>
    %15 = arith.divf %13, %14 : vector<1x64xf32>
    %16 = vector.broadcast %15 : vector<1x64xf32> to vector<8x64xf32>
    %17 = arith.subf %11, %16 : vector<8x64xf32>
    %18 = arith.mulf %17, %17 : vector<8x64xf32>
    %cst_7 = arith.constant dense<0.000000e+00> : vector<64xf32>
    %19 = vector.multi_reduction <add>, %18, %cst_7 [0] : vector<8x64xf32> to vector<64xf32>
    %20 = vector.shape_cast %19 : vector<64xf32> to vector<1x64xf32>
    %cst_8 = arith.constant 8.000000e+00 : f32
    %21 = vector.broadcast %cst_8 : f32 to vector<1x64xf32>
    %22 = arith.divf %20, %21 : vector<1x64xf32>
    %c0_9 = arith.constant 0 : index
    %c0_10 = arith.constant 0 : index
    %23 = vector.load %arg2[%c0_9, %c0_10] : memref<1x64xf32, #tpu.memory_space<vmem>>, vector<1x64xf32>
    %cst_11 = arith.constant 9.99999974E-6 : f32
    %24 = vector.broadcast %cst_11 : f32 to vector<1x64xf32>
    %25 = arith.addf %22, %24 : vector<1x64xf32>
    %26 = math.rsqrt %25 : vector<1x64xf32>
    %27 = arith.mulf %23, %26 : vector<1x64xf32>
    %28 = vector.broadcast %27 : vector<1x64xf32> to vector<8x64xf32>
    %29 = arith.mulf %17, %28 : vector<8x64xf32>
    %c0_12 = arith.constant 0 : index
    %c0_13 = arith.constant 0 : index
    %30 = vector.load %arg3[%c0_12, %c0_13] : memref<1x64xf32, #tpu.memory_space<vmem>>, vector<1x64xf32>
    %31 = vector.broadcast %30 : vector<1x64xf32> to vector<8x64xf32>
    %32 = arith.addf %29, %31 : vector<8x64xf32>
    %cst_14 = arith.constant 0.000000e+00 : f32
    %33 = vector.broadcast %cst_14 : f32 to vector<8x64xf32>
    %34 = arith.maximumf %32, %33 : vector<8x64xf32>
    %35 = vector.extract_strided_slice %10 {offsets = [8, 0], sizes = [8, 64], strides = [1, 1]} : vector<16x64xf32> to vector<8x64xf32>
    %cst_15 = arith.constant dense<0.000000e+00> : vector<64xf32>
    %36 = vector.multi_reduction <add>, %35, %cst_15 [0] : vector<8x64xf32> to vector<64xf32>
    %37 = vector.shape_cast %36 : vector<64xf32> to vector<1x64xf32>
    %cst_16 = arith.constant 8.000000e+00 : f32
    %38 = vector.broadcast %cst_16 : f32 to vector<1x64xf32>
    %39 = arith.divf %37, %38 : vector<1x64xf32>
    %40 = vector.broadcast %39 : vector<1x64xf32> to vector<8x64xf32>
    %41 = arith.subf %35, %40 : vector<8x64xf32>
    %42 = arith.mulf %41, %41 : vector<8x64xf32>
    %cst_17 = arith.constant dense<0.000000e+00> : vector<64xf32>
    %43 = vector.multi_reduction <add>, %42, %cst_17 [0] : vector<8x64xf32> to vector<64xf32>
    %44 = vector.shape_cast %43 : vector<64xf32> to vector<1x64xf32>
    %cst_18 = arith.constant 8.000000e+00 : f32
    %45 = vector.broadcast %cst_18 : f32 to vector<1x64xf32>
    %46 = arith.divf %44, %45 : vector<1x64xf32>
    %c0_19 = arith.constant 0 : index
    %c0_20 = arith.constant 0 : index
    %47 = vector.load %arg2[%c0_19, %c0_20] : memref<1x64xf32, #tpu.memory_space<vmem>>, vector<1x64xf32>
    %cst_21 = arith.constant 9.99999974E-6 : f32
    %48 = vector.broadcast %cst_21 : f32 to vector<1x64xf32>
    %49 = arith.addf %46, %48 : vector<1x64xf32>
    %50 = math.rsqrt %49 : vector<1x64xf32>
    %51 = arith.mulf %47, %50 : vector<1x64xf32>
    %52 = vector.broadcast %51 : vector<1x64xf32> to vector<8x64xf32>
    %53 = arith.mulf %41, %52 : vector<8x64xf32>
    %c0_22 = arith.constant 0 : index
    %c0_23 = arith.constant 0 : index
    %54 = vector.load %arg3[%c0_22, %c0_23] : memref<1x64xf32, #tpu.memory_space<vmem>>, vector<1x64xf32>
    %55 = vector.broadcast %54 : vector<1x64xf32> to vector<8x64xf32>
    %56 = arith.addf %53, %55 : vector<8x64xf32>
    %cst_24 = arith.constant 0.000000e+00 : f32
    %57 = vector.broadcast %cst_24 : f32 to vector<8x64xf32>
    %58 = arith.maximumf %56, %57 : vector<8x64xf32>
    %59 = tpu.concatenate %34, %58 in 0 : vector<8x64xf32>, vector<8x64xf32> -> vector<16x64xf32>
    %c0_25 = arith.constant 0 : index
    %c0_26 = arith.constant 0 : index
    %60 = vector.load %arg4[%c0_25, %c0_26] : memref<64x64xf32, #tpu.memory_space<vmem>>, vector<64x64xf32>
    %cst_27 = arith.constant dense<0.000000e+00> : vector<16x64xf32>
    %61 = tpu.matmul %59, %60, %cst_27 {dimension_numbers = #tpu.dot_dimension_numbers<[1], [0], [0], [1], [0, 0, 1, 1], [], []>} : vector<16x64xf32>, vector<64x64xf32>, vector<16x64xf32> -> vector<16x64xf32>
    %62 = vector.extract_strided_slice %61 {offsets = [0, 0], sizes = [8, 64], strides = [1, 1]} : vector<16x64xf32> to vector<8x64xf32>
    %cst_28 = arith.constant dense<0.000000e+00> : vector<64xf32>
    %63 = vector.multi_reduction <add>, %62, %cst_28 [0] : vector<8x64xf32> to vector<64xf32>
    %64 = vector.shape_cast %63 : vector<64xf32> to vector<1x64xf32>
    %cst_29 = arith.constant 8.000000e+00 : f32
    %65 = vector.broadcast %cst_29 : f32 to vector<1x64xf32>
    %66 = arith.divf %64, %65 : vector<1x64xf32>
    %67 = vector.broadcast %66 : vector<1x64xf32> to vector<8x64xf32>
    %68 = arith.subf %62, %67 : vector<8x64xf32>
    %69 = arith.mulf %68, %68 : vector<8x64xf32>
    %cst_30 = arith.constant dense<0.000000e+00> : vector<64xf32>
    %70 = vector.multi_reduction <add>, %69, %cst_30 [0] : vector<8x64xf32> to vector<64xf32>
    %71 = vector.shape_cast %70 : vector<64xf32> to vector<1x64xf32>
    %cst_31 = arith.constant 8.000000e+00 : f32
    %72 = vector.broadcast %cst_31 : f32 to vector<1x64xf32>
    %73 = arith.divf %71, %72 : vector<1x64xf32>
    %cst_32 = arith.constant 9.99999974E-6 : f32
    %74 = vector.broadcast %cst_32 : f32 to vector<1x64xf32>
    %75 = arith.addf %73, %74 : vector<1x64xf32>
    %76 = math.rsqrt %75 : vector<1x64xf32>
    %77 = vector.broadcast %76 : vector<1x64xf32> to vector<8x64xf32>
    %78 = arith.mulf %68, %77 : vector<8x64xf32>
    %79 = vector.extract_strided_slice %61 {offsets = [8, 0], sizes = [8, 64], strides = [1, 1]} : vector<16x64xf32> to vector<8x64xf32>
    %cst_33 = arith.constant dense<0.000000e+00> : vector<64xf32>
    %80 = vector.multi_reduction <add>, %79, %cst_33 [0] : vector<8x64xf32> to vector<64xf32>
    %81 = vector.shape_cast %80 : vector<64xf32> to vector<1x64xf32>
    %cst_34 = arith.constant 8.000000e+00 : f32
    %82 = vector.broadcast %cst_34 : f32 to vector<1x64xf32>
    %83 = arith.divf %81, %82 : vector<1x64xf32>
    %84 = vector.broadcast %83 : vector<1x64xf32> to vector<8x64xf32>
    %85 = arith.subf %79, %84 : vector<8x64xf32>
    %86 = arith.mulf %85, %85 : vector<8x64xf32>
    %cst_35 = arith.constant dense<0.000000e+00> : vector<64xf32>
    %87 = vector.multi_reduction <add>, %86, %cst_35 [0] : vector<8x64xf32> to vector<64xf32>
    %88 = vector.shape_cast %87 : vector<64xf32> to vector<1x64xf32>
    %cst_36 = arith.constant 8.000000e+00 : f32
    %89 = vector.broadcast %cst_36 : f32 to vector<1x64xf32>
    %90 = arith.divf %88, %89 : vector<1x64xf32>
    %cst_37 = arith.constant 9.99999974E-6 : f32
    %91 = vector.broadcast %cst_37 : f32 to vector<1x64xf32>
    %92 = arith.addf %90, %91 : vector<1x64xf32>
    %93 = math.rsqrt %92 : vector<1x64xf32>
    %94 = vector.broadcast %93 : vector<1x64xf32> to vector<8x64xf32>
    %95 = arith.mulf %85, %94 : vector<8x64xf32>
    %cst_38 = arith.constant dense<0.000000e+00> : vector<64x64xf32>
    %96 = tpu.matmul %78, %95, %cst_38 {dimension_numbers = #tpu.dot_dimension_numbers<[0], [0], [1], [1], [0, 1, 1, 1], [], []>} : vector<8x64xf32>, vector<8x64xf32>, vector<64x64xf32> -> vector<64x64xf32>
    %cst_39 = arith.constant 1.250000e-01 : f32
    %97 = vector.broadcast %cst_39 : f32 to vector<64x64xf32>
    %98 = arith.mulf %96, %97 : vector<64x64xf32>
    %99 = tpu.iota {dimensions = array<i32: 0>} : vector<64x64xi32>
    %100 = tpu.iota {dimensions = array<i32: 1>} : vector<64x64xi32>
    %101 = arith.cmpi eq, %99, %100 : vector<64x64xi32>
    %102 = arith.mulf %98, %98 : vector<64x64xf32>
    %cst_40 = arith.constant 1.000000e+00 : f32
    %103 = vector.broadcast %cst_40 : f32 to vector<64x64xf32>
    %104 = arith.subf %98, %103 : vector<64x64xf32>
    %105 = vector.shape_cast %102 : vector<64x64xf32> to vector<1x64x64xf32>
    %cst_41 = arith.constant dense<0.000000e+00> : vector<1xf32>
    %106 = vector.multi_reduction <add>, %105, %cst_41 [1, 2] : vector<1x64x64xf32> to vector<1xf32>
    %107 = vector.shape_cast %106 : vector<1xf32> to vector<1x1x1xf32>
    %108 = vector.extract %107[0, 0, 0] : f32 from vector<1x1x1xf32>
    %109 = arith.mulf %104, %104 : vector<64x64xf32>
    %cst_42 = arith.constant 5.000000e-03 : f32
    %110 = vector.broadcast %cst_42 : f32 to vector<64x64xf32>
    %111 = arith.mulf %110, %102 : vector<64x64xf32>
    %112 = arith.subf %109, %111 : vector<64x64xf32>
    %cst_43 = arith.constant 0.000000e+00 : f32
    %113 = vector.broadcast %cst_43 : f32 to vector<64x64xf32>
    %114 = arith.select %101, %112, %113 : vector<64x64xi1>, vector<64x64xf32>
    %115 = vector.shape_cast %114 : vector<64x64xf32> to vector<1x64x64xf32>
    %cst_44 = arith.constant dense<0.000000e+00> : vector<1xf32>
    %116 = vector.multi_reduction <add>, %115, %cst_44 [1, 2] : vector<1x64x64xf32> to vector<1xf32>
    %117 = vector.shape_cast %116 : vector<1xf32> to vector<1x1x1xf32>
    %118 = vector.extract %117[0, 0, 0] : f32 from vector<1x1x1xf32>
    %cst_45 = arith.constant 5.000000e-03 : f32
    %119 = arith.mulf %cst_45, %108 : f32
    %120 = arith.addf %118, %119 : f32
    %c0_46 = arith.constant 0 : index
    %121 = memref.load %arg5[%c0_46] : memref<1xf32, #tpu.memory_space<smem>>
    memref.store %120, %arg5[%c0_46] : memref<1xf32, #tpu.memory_space<smem>>
    return
  }
}

</mosaic_0001>

<bundles_post_ra>
// kernel: tpu_custom_call.1
= control target key start
LH: loop header
LB: loop body
LE: loop exit
PB: predicated region body
PF: predicated region fallthrough
CT: control target
= control target key end

     0   :  { %10 = vsyncpa [#allocation3], 0  ;;  %s1057_s0 = inlined_call_operand.hbm [shape: f32[16,32], index: 0, kind: input, shape index: {}]   ;;  %s1058_s1 = inlined_call_operand.hbm [shape: f32[32,64], index: 1, kind: input, shape index: {}]   ;;  %s1059_s2 = inlined_call_operand.vmem [shape: f32[1,64], index: 2, kind: input, shape index: {}]   ;;  %s1060_s3 = inlined_call_operand.vmem [shape: f32[1,64], index: 3, kind: input, shape index: {}]   ;;  %s1061_s4 = inlined_call_operand.hbm [shape: f32[64,64], index: 4, kind: input, shape index: {}]   ;;  %s1062_s5 = inlined_call_operand.hbm [shape: f32[1], index: 5, kind: output, shape index: {}]  }
   0x1   :  { %11 = vsyncpa [#allocation6], 0 }
   0x2   :  { %12 = vsyncpa [#allocation4], 0  ;;  %s890_s18 = smov [#allocation5]   ;;  %s891_s20 = smov [#allocation2]  }
   0x3   :  { %s30_s19 = sshll.u32 %s890_s18, 4  ;;  %s18_s21 = sshll.u32 %s891_s20, 4  ;;  %s31_s19 = int_to_ptr.vmem [resolvable:$true] %s30_s19  ;;  %s926_s21 = int_to_ptr.vmem [resolvable:$true] %s18_s21 }
   0x4   :  { %s808_s24 = scalar_lea.hbm %s1058_s1, 512 }
   0x5   :  { %p809_p0 = scmp.ne.s32.totalorder %s1058_s1, %s808_s24  ;;  %p812_p1 = scmp.lt.u32.totalorder %s808_s24, %s1058_s1 }
   0x7   :  { %p814_p2 = pnand %p812_p1, %p809_p0 }
   0x9   :  { %817 = shalt.err (!%p814_p2)
}
   0xa   :  { %s818_s29 = scalar_lea.vmem %s31_s19, 512  ;;  %p823_p4 = scmp.lt.s32.totalorder %s31_s19, %s31_s19 }
   0xb   :  { %p819_p3 = scmp.ne.s32.totalorder %s31_s19, %s818_s29  ;;  %p824_p5 = scmp.lt.s32.totalorder %s818_s29, %s818_s29 }
   0xd   :  { %p825_p6 = por %p824_p5, %p823_p4 }
   0xf   :  { %p826_p7 = pnand %p825_p6, %p819_p3 }
  0x11   :  { %829 = shalt.err (!%p826_p7)
}
  0x12   :  { %s892_s30 = smov 128   ;;  %s893_s6 = smov 8  }
  0x13   :  { %36 = dma.hbm_to_vmem [thread:$0]  %s1058_s1, 512, %s31_s19, [#allocation6], %s892_s30, %s892_s30, %s893_s6  }
  0x14   :  { %s830_s11 = scalar_lea.hbm %s1057_s0, 256 }
  0x15   :  { %p831_p8 = scmp.ne.s32.totalorder %s1057_s0, %s830_s11  ;;  %p834_p9 = scmp.lt.u32.totalorder %s830_s11, %s1057_s0 }
  0x17   :  { %p836_p10 = pnand %p834_p9, %p831_p8 }
  0x19   :  { %839 = shalt.err (!%p836_p10)
}
  0x1a   :  { %s840_s16 = scalar_lea.vmem %s926_s21, 256  ;;  %p845_p12 = scmp.lt.s32.totalorder %s926_s21, %s926_s21 }
  0x1b   :  { %p841_p11 = scmp.ne.s32.totalorder %s926_s21, %s840_s16  ;;  %p846_p13 = scmp.lt.s32.totalorder %s840_s16, %s840_s16 }
  0x1d   :  { %p847_p0 = por %p846_p13, %p845_p12 }
  0x1f   :  { %p848_p1 = pnand %p847_p0, %p841_p11 }
  0x21   :  { %851 = shalt.err (!%p848_p1)
}
  0x22   :  { %24 = dma.hbm_to_vmem [thread:$0]  %s1057_s0, 256, %s926_s21, [#allocation3], %s892_s30, %s892_s30, %s893_s6  }
  0x23   :  { %s894_s18 = smov [#allocation7]   ;;  %s852_s23 = scalar_lea.hbm %s1061_s4, 1024 }
  0x24   :  { %s46_s19 = sshll.u32 %s894_s18, 4  ;;  %p853_p2 = scmp.ne.s32.totalorder %s1061_s4, %s852_s23  ;;  %s47_s19 = int_to_ptr.vmem [resolvable:$true] %s46_s19 }
  0x25   :  { %p856_p3 = scmp.lt.u32.totalorder %s852_s23, %s1061_s4 }
  0x27   :  { %p858_p4 = pnand %p856_p3, %p853_p2 }
  0x29   :  { %861 = shalt.err (!%p858_p4)
}
  0x2a   :  { %s862_s28 = scalar_lea.vmem %s47_s19, 1024  ;;  %p867_p6 = scmp.lt.s32.totalorder %s47_s19, %s47_s19 }
  0x2b   :  { %p863_p5 = scmp.ne.s32.totalorder %s47_s19, %s862_s28  ;;  %p868_p7 = scmp.lt.s32.totalorder %s862_s28, %s862_s28 }
  0x2d   :  { %p869_p8 = por %p868_p7, %p867_p6 }
  0x2f   :  { %p870_p9 = pnand %p869_p8, %p863_p5 }
  0x31   :  { %873 = shalt.err (!%p870_p9)
}
  0x32   :  { %52 = dma.hbm_to_vmem [thread:$0]  %s1061_s4, 1024, %s47_s19, [#allocation6], %s892_s30, %s892_s30, %s893_s6  }
  0x33   :  { %884 = dma.done.wait [#allocation3], 256  }
  0x34   :  { %885 = vsyncadd [#allocation3], 4294967040 }
  0x35   :  { %886 = dma.done.wait [#allocation6], 1536  }
  0x36   :  { %887 = vsyncadd [#allocation6], 4294965760  ;;  %v62_v0 = vld [vmem:[#allocation2] sm:$0xff]  ;;  %vm66_vm0 = vcmask 261120   ;;  %v63_v1 = vld [vmem:[#allocation2 + $0x8] sm:$0xff]  ;;  %vm164_vm1 = vcmask 523264  }
  0x37   :  { %v64_v2 = vmul.f32 %v62_v0, %v62_v0  ;;  %v65_v3 = vmul.f32 %v63_v1, %v63_v1  ;;  %v79_v6 = vld [vmem:[#allocation5] sm:$0xff]  ;;  %v80_v7 = vld [vmem:[#allocation5 + $0x8] sm:$0xff]  ;;  %v81_v8 = vld [vmem:[#allocation5 + $0x10] sm:$0xff]  ;;  %vm397_vm2 = vcmask 64512   ;;  %s874_s11 = scalar_lea.hbm %s1062_s5, 16 }
  0x38   :  { %v759_v9 = vpack.c.bf16 %v80_v7, %v79_v6  ;;  %v82_v10 = vld [vmem:[#allocation5 + $0x18] sm:$0xff]  ;;  %v234_v20 = vld [vmem:[#allocation7] sm:$0xff]  ;;  %v235_v21 = vld [vmem:[#allocation7 + $0x8] sm:$0xff]  ;;  %p875_p10 = scmp.ne.s32.totalorder %s1062_s5, %s874_s11  ;;  %p878_p11 = scmp.lt.u32.totalorder %s874_s11, %s1062_s5 }
  0x39   :  { %v67_v4 = vsel %vm66_vm0, %v64_v2, 0.0  ;;  %v70_v5 = vsel %vm66_vm0, %v65_v3, 0.0  ;;  %v763_v11 = vpack.c.bf16 %v82_v10, %v81_v8  ;;  %v767_v22 = vpack.c.bf16 %v235_v21, %v234_v20  ;;  %v236_v23 = vld [vmem:[#allocation7 + $0x10] sm:$0xff]  ;;  %v237_v24 = vld [vmem:[#allocation7 + $0x18] sm:$0xff]  ;;  %v238_v26 = vld [vmem:[#allocation7 + $0x20] sm:$0xff] }
  0x3a   :  { %68 = vadd.xlane.f32.xlu0 %v67_v4  ;;  %760 = vmatprep.subr.bf16.mxu0 %v759_v9  ;;  %v771_v25 = vpack.c.bf16 %v237_v24, %v236_v23  ;;  %v239_v27 = vld [vmem:[#allocation7 + $0x28] sm:$0xff]  ;;  %v240_v29 = vld [vmem:[#allocation7 + $0x30] sm:$0xff]  ;;  %v241_v30 = vld [vmem:[#allocation7 + $0x38] sm:$0xff]  ;;  %v189_v8 = vlaneseq  ;;  %p880_p12 = pnand %p878_p11, %p875_p10 }
  0x3b   :  { %762 = vmatpush3.bf16.msra.mxu0 %v759_v9  ;;  %768 = vmatprep.subr.bf16.mxu1 %v767_v22  ;;  %v775_v28 = vpack.c.bf16 %v239_v27, %v238_v26  ;;  %v779_v31 = vpack.c.bf16 %v241_v30, %v240_v29  ;;  %v184_v10 = vld [vmem:[%s1059_s2] sm:$0x1] }
  0x3c   :  { %764 = vmatprep.subr.bf16.mxu0 %v763_v11  ;;  %770 = vmatpush3.bf16.msra.mxu1 %v767_v22  ;;  %v987_v9 = vshrl.u32 %v189_v8, 7 }
  0x3d   :  { %772 = vmatprep.subr.bf16.mxu1 %v771_v25 }
  0x3e   :  { %71 = vadd.xlane.f32.xlu0 %v70_v5 }
  0x3f   :  { %766 = vmatpush3.bf16.msra.mxu0 %v763_v11  ;;  %v191_v11 = vsub.s32 0, %v987_v9 }
  0x40   :  { %774 = vmatpush3.bf16.msra.mxu1 %v771_v25 }
  0x41   :  { %776 = vmatprep.subr.bf16.mxu1 %v775_v28 }
  0x44   :  { %778 = vmatpush3.bf16.msra.mxu1 %v775_v28 }
  0x45   :  { %780 = vmatprep.subr.bf16.mxu1 %v779_v31 }
  0x48   :  { %782 = vmatpush3.bf16.msra.mxu1 %v779_v31 }
  0xc7   :  { %v69_v12 = vpop.xlane.xlu0 %68 }
  0xc8   :  { %v73_v13 = vmax.f32 %v69_v12, 1e-24 }
  0xca   :  { %796 = vrsqrt.f32 %v73_v13 }
  0xcb   :  { %v72_v14 = vpop.xlane.xlu0 %71 }
  0xcc   :  { %v74_v15 = vmax.f32 %v72_v14, 1e-24 }
  0xce   :  { %798 = vrsqrt.f32 %v74_v15 }
  0xd4   :  { %v797_v16 = vpop.eup %796 }
  0xd5   :  { %v77_v17 = vmul.f32 %v797_v16, %v62_v0 }
  0xd7   :  { %723 = vmatprep.mubr.msk.f32.mxu0 %vm66_vm0, %v77_v17 }
  0xd8   :  { %v799_v18 = vpop.eup %798 }
  0xd9   :  { %v78_v19 = vmul.f32 %v799_v18, %v63_v1  ;;  %v671_v18 = vld [vmem:[%s1060_s3] ss:$0 sm:$0xff] }
  0xdb   :  { %724 = vmatmul.mubr.msk.f32.vlgmr.msra.gmra.mrb[0].mxu0 %vm66_vm0, %v78_v19 }
 0x1ae   :  { %v725_v32 = vpop.f32.mrb[0].mxu0 }
 0x1af   :  { %v204_v33 = vsel %vm164_vm1, %v725_v32, 0.0  ;;  %v155_v34 = vpop.f32.mrb[1].mxu0 }
 0x1b0   :  { %v205_v35 = vrot.slane %v204_v33, 4  ;;  %v165_v36 = vsel %vm164_vm1, %v155_v34, 0.0 }
 0x1b1   :  { %v166_v37 = vrot.slane %v165_v36, 4 }
 0x1b2   :  { %v206_v38 = vadd.f32 %v205_v35, %v204_v33 }
 0x1b3   :  { %v167_v39 = vadd.f32 %v166_v37, %v165_v36 }
 0x1b4   :  { %v207_v40 = vrot.slane %v206_v38, 2 }
 0x1b5   :  { %v168_v41 = vrot.slane %v167_v39, 2 }
 0x1b6   :  { %v208_v42 = vadd.f32 %v207_v40, %v206_v38 }
 0x1b7   :  { %v169_v43 = vadd.f32 %v168_v41, %v167_v39 }
 0x1b8   :  { %v209_v44 = vrot.slane %v208_v42, 1 }
 0x1b9   :  { %v170_v45 = vrot.slane %v169_v43, 1 }
 0x1ba   :  { %v210_v46 = vadd.f32 %v209_v44, %v208_v42 }
 0x1bb   :  { %v171_v47 = vadd.f32 %v170_v45, %v169_v43 }
 0x1bc   :  { %v211_v48 = vmul.f32 0.125, %v210_v46 }
 0x1bd   :  { %v173_v49 = vmul.f32 0.125, %v171_v47 }
 0x1be   :  { %v212_v50 = vsub.f32 %v725_v32, %v211_v48 }
 0x1bf   :  { %v174_v51 = vsub.f32 %v155_v34, %v173_v49 }
 0x1c0   :  { %v213_v52 = vmul.f32 %v212_v50, %v212_v50 }
 0x1c1   :  { %v175_v53 = vmul.f32 %v174_v51, %v174_v51 }
 0x1c2   :  { %v214_v54 = vsel %vm164_vm1, %v213_v52, 0.0 }
 0x1c3   :  { %v215_v55 = vrot.slane %v214_v54, 4  ;;  %v176_v56 = vsel %vm164_vm1, %v175_v53, 0.0 }
 0x1c4   :  { %v177_v57 = vrot.slane %v176_v56, 4 }
 0x1c5   :  { %v216_v58 = vadd.f32 %v215_v55, %v214_v54 }
 0x1c6   :  { %v178_v59 = vadd.f32 %v177_v57, %v176_v56 }
 0x1c7   :  { %v217_v60 = vrot.slane %v216_v58, 2 }
 0x1c8   :  { %v179_v61 = vrot.slane %v178_v59, 2 }
 0x1c9   :  { %v218_v62 = vadd.f32 %v217_v60, %v216_v58 }
 0x1ca   :  { %v180_v63 = vadd.f32 %v179_v61, %v178_v59 }
 0x1cb   :  { %v219_v0 = vrot.slane %v218_v62, 1 }
 0x1cc   :  { %v181_v1 = vrot.slane %v180_v63, 1 }
 0x1cd   :  { %v220_v2 = vadd.f32 %v219_v0, %v218_v62 }
 0x1ce   :  { %v182_v3 = vadd.f32 %v181_v1, %v180_v63 }
 0x1cf   :  { %v221_v4 = vmul.f32 0.125, %v220_v2 }
 0x1d0   :  { %v183_v5 = vmul.f32 0.125, %v182_v3 }
 0x1d1   :  { %v222_v6 = vadd.f32 1e-05, %v221_v4 }
 0x1d2   :  { %v185_v7 = vadd.f32 1e-05, %v183_v5 }
 0x1d3   :  { %800 = vrsqrt.f32 %v222_v6 }
 0x1d4   :  { %802 = vrsqrt.f32 %v185_v7 }
 0x1dd   :  { %v801_v12 = vpop.eup %800 }
 0x1de   :  { %v803_v13 = vpop.eup %802  ;;  %v224_v14 = vmul.f32 %v801_v12, %v184_v10 }
 0x1df   :  { %v187_v15 = vmul.f32 %v803_v13, %v184_v10 }
 0x1e0   :  { %v229_v16 = vrot.slane %v224_v14, %v191_v11 }
 0x1e1   :  { %v192_v17 = vrot.slane %v187_v15, %v191_v11 }
 0x1e2   :  { %v231_v19 = vmul.f32 %v229_v16, %v212_v50 }
 0x1e3   :  { %v194_v20 = vmul.f32 %v192_v17, %v174_v51 }
 0x1e4   :  { %v232_v21 = vadd.f32 %v671_v18, %v231_v19  ;;  %v1012_v19 = vand.u32 127, %v189_v8 }
 0x1e5   :  { %v202_v22 = vadd.f32 %v671_v18, %v194_v20  ;;  %v537_v18 = vadd.s32 8, %v987_v9 }
 0x1e6   :  { %v233_v24 = vmax.f32 %v232_v21, 0.0  ;;  %vm546_vm4 = vcmp.eq.s32.totalorder %v987_v9, %v1012_v19 }
 0x1e7   :  { %v203_v23 = vmax.f32 %v202_v22, 0.0  ;;  %vm547_vm3 = vcmp.eq.s32.totalorder %v537_v18, %v1012_v19 }
 0x1e9   :  { %742 = vmatprep.mubr.msk.f32.mxu1 %vm164_vm1, %v203_v23 }
 0x1ea   :  { %743 = vmatmul.mubr.msk.f32.vlgmr.msra.gmra.mrb[0].mxu1 %vm164_vm1, %v233_v24 }
 0x2bd   :  { %v744_v25 = vpop.f32.mrb[0].mxu1 }
 0x2be   :  { %v344_v26 = vsel %vm164_vm1, %v744_v25, 0.0  ;;  %v314_v27 = vpop.f32.mrb[1].mxu1 }
 0x2bf   :  { %v345_v28 = vrot.slane %v344_v26, 4  ;;  %v323_v29 = vsel %vm164_vm1, %v314_v27, 0.0 }
 0x2c0   :  { %v324_v30 = vrot.slane %v323_v29, 4 }
 0x2c1   :  { %v346_v31 = vadd.f32 %v345_v28, %v344_v26 }
 0x2c2   :  { %v325_v32 = vadd.f32 %v324_v30, %v323_v29 }
 0x2c3   :  { %v347_v33 = vrot.slane %v346_v31, 2 }
 0x2c4   :  { %v326_v34 = vrot.slane %v325_v32, 2 }
 0x2c5   :  { %v348_v35 = vadd.f32 %v347_v33, %v346_v31 }
 0x2c6   :  { %v327_v36 = vadd.f32 %v326_v34, %v325_v32 }
 0x2c7   :  { %v349_v37 = vrot.slane %v348_v35, 1 }
 0x2c8   :  { %v328_v38 = vrot.slane %v327_v36, 1 }
 0x2c9   :  { %v350_v39 = vadd.f32 %v349_v37, %v348_v35 }
 0x2ca   :  { %v329_v40 = vadd.f32 %v328_v38, %v327_v36 }
 0x2cb   :  { %v351_v41 = vmul.f32 0.125, %v350_v39  ;;  %v539_v39 = vadd.s32 24, %v987_v9 }
 0x2cc   :  { %v330_v42 = vmul.f32 0.125, %v329_v40 }
 0x2cd   :  { %v352_v43 = vsub.f32 %v744_v25, %v351_v41  ;;  %vm549_vm5 = vcmp.eq.s32.totalorder %v539_v39, %v1012_v19 }
 0x2ce   :  { %v331_v44 = vsub.f32 %v314_v27, %v330_v42 }
 0x2cf   :  { %v353_v45 = vmul.f32 %v352_v43, %v352_v43 }
 0x2d0   :  { %v332_v46 = vmul.f32 %v331_v44, %v331_v44 }
 0x2d1   :  { %v354_v47 = vsel %vm164_vm1, %v353_v45, 0.0 }
 0x2d2   :  { %v355_v48 = vrot.slane %v354_v47, 4  ;;  %v333_v49 = vsel %vm164_vm1, %v332_v46, 0.0 }
 0x2d3   :  { %v334_v50 = vrot.slane %v333_v49, 4 }
 0x2d4   :  { %v356_v51 = vadd.f32 %v355_v48, %v354_v47 }
 0x2d5   :  { %v335_v52 = vadd.f32 %v334_v50, %v333_v49 }
 0x2d6   :  { %v357_v53 = vrot.slane %v356_v51, 2 }
 0x2d7   :  { %v336_v54 = vrot.slane %v335_v52, 2 }
 0x2d8   :  { %v358_v55 = vadd.f32 %v357_v53, %v356_v51 }
 0x2d9   :  { %v337_v56 = vadd.f32 %v336_v54, %v335_v52 }
 0x2da   :  { %v359_v57 = vrot.slane %v358_v55, 1 }
 0x2db   :  { %v338_v58 = vrot.slane %v337_v56, 1 }
 0x2dc   :  { %v360_v59 = vadd.f32 %v359_v57, %v358_v55 }
 0x2dd   :  { %v339_v60 = vadd.f32 %v338_v58, %v337_v56 }
 0x2de   :  { %v361_v61 = vmul.f32 0.125, %v360_v59 }
 0x2df   :  { %v340_v62 = vmul.f32 0.125, %v339_v60 }
 0x2e0   :  { %v362_v63 = vadd.f32 1e-05, %v361_v61 }
 0x2e1   :  { %v341_v0 = vadd.f32 1e-05, %v340_v62 }
 0x2e2   :  { %804 = vrsqrt.f32 %v362_v63  ;;  %v541_v63 = vadd.s32 40, %v987_v9 }
 0x2e3   :  { %806 = vrsqrt.f32 %v341_v0 }
 0x2e4   :  { %vm551_vm7 = vcmp.eq.s32.totalorder %v541_v63, %v1012_v19 }
 0x2ec   :  { %v805_v1 = vpop.eup %804 }
 0x2ed   :  { %v807_v2 = vpop.eup %806  ;;  %v364_v3 = vmul.f32 %v805_v1, %v352_v43 }
 0x2ee   :  { %v343_v4 = vmul.f32 %v807_v2, %v331_v44  ;;  %v538_v44 = vadd.s32 16, %v987_v9 }
 0x2ef   :  { %745 = vmatprep.subr.mxu0 %v364_v3  ;;  %783 = vmatprep.subr.mxu1 %v364_v3 }
 0x2f0   :  { %746 = vmatpush3.msra.mxu0 %v364_v3  ;;  %784 = vmatpush3.msra.mxu1 %v364_v3  ;;  %vm548_vm6 = vcmp.eq.s32.totalorder %v538_v44, %v1012_v19 }
 0x2f1   :  { %365 = vxpose.xlu1.b32.start.end [1/1] (short) (narrow) %v343_v4, 64  ;;  %v540_v4 = vadd.s32 32, %v987_v9 }
 0x2f3   :  { %vm550_vm8 = vcmp.eq.s32.totalorder %v540_v4, %v1012_v19 }
 0x371   :  { %v381_v5 = vpop.trf.xlu1 }
 0x372   :  { %747 = vmatprep.mubr.msk.f32.mxu0 %vm397_vm2, %v381_v5 }
 0x375   :  { %v382_v6 = vpop.trf.xlu1 }
 0x376   :  { %748 = vmatmul.mubr.msk.f32.vlgmr.msra.gmra.mrb[2].mxu0 %vm397_vm2, %v382_v6 }
 0x379   :  { %v383_v7 = vpop.trf.xlu1 }
 0x37a   :  { %750 = vmatprep.mubr.msk.f32.mxu0 %vm397_vm2, %v383_v7 }
 0x37d   :  { %v384_v10 = vpop.trf.xlu1 }
 0x37e   :  { %751 = vmatmul.mubr.msk.f32.gmra.mrb[4].mxu0 %vm397_vm2, %v384_v10 }
 0x381   :  { %v385_v11 = vpop.trf.xlu1 }
 0x382   :  { %753 = vmatprep.mubr.msk.f32.mxu0 %vm397_vm2, %v385_v11 }
 0x385   :  { %v386_v12 = vpop.trf.xlu1 }
 0x386   :  { %754 = vmatmul.mubr.msk.f32.gmra.mrb[6].mxu0 %vm397_vm2, %v386_v12 }
 0x389   :  { %v387_v13 = vpop.trf.xlu1 }
 0x38a   :  { %756 = vmatprep.mubr.msk.f32.mxu1 %vm397_vm2, %v387_v13 }
 0x38d   :  { %v388_v14 = vpop.trf.xlu1 }
 0x38e   :  { %757 = vmatmul.mubr.msk.f32.vlgmr.msra.gmra.mrb[2].mxu1 %vm397_vm2, %v388_v14 }
 0x449   :  { %v749_v15 = vpop.f32.mrb[2].mxu0 }
 0x44a   :  { %v528_v16 = vmul.f32 0.125, %v749_v15  ;;  %v488_v17 = vpop.f32.mrb[3].mxu0 }
 0x44b   :  { %v527_v20 = vmul.f32 0.125, %v488_v17 }
 0x44c   :  { %v555_v21 = vmul.f32 %v528_v16, %v528_v16  ;;  %v683_v22 = vadd.f32 -1.0, %v528_v16 }
 0x44d   :  { %v554_v23 = vmul.f32 %v527_v20, %v527_v20  ;;  %v682_v24 = vadd.f32 -1.0, %v527_v20 }
 0x44e   :  { %v571_v25 = vsel %vm164_vm1, %v555_v21, 0.0  ;;  %v595_v26 = vmul.f32 %v683_v22, %v683_v22  ;;  %v603_v27 = vmul.f32 0.005, %v555_v21 }
 0x44f   :  { %v570_v28 = vsel %vm164_vm1, %v554_v23, 0.0  ;;  %v594_v29 = vmul.f32 %v682_v24, %v682_v24  ;;  %v602_v30 = vmul.f32 0.005, %v554_v23 }
 0x450   :  { %v611_v31 = vsub.f32 %v595_v26, %v603_v27  ;;  %v572_v8 = vadd.f32 %v571_v25, %v570_v28 }
 0x451   :  { %v610_v32 = vsub.f32 %v594_v29, %v602_v30  ;;  %v752_v33 = vpop.f32.mrb[4].mxu0  ;;  %v543_v29 = vadd.s32 56, %v987_v9 }
 0x452   :  { %v619_v34 = vsel %vm547_vm3, %v611_v31, 0.0  ;;  %v530_v35 = vmul.f32 0.125, %v752_v33  ;;  %v498_v36 = vpop.f32.mrb[5].mxu0 }
 0x453   :  { %v627_v37 = vsel %vm164_vm1, %v619_v34, 0.0  ;;  %v618_v38 = vsel %vm546_vm4, %v610_v32, 0.0  ;;  %v529_v40 = vmul.f32 0.125, %v498_v36  ;;  %v542_v32 = vadd.s32 48, %v987_v9 }
 0x454   :  { %v626_v41 = vsel %vm164_vm1, %v618_v38, 0.0  ;;  %v557_v42 = vmul.f32 %v530_v35, %v530_v35  ;;  %v685_v43 = vadd.f32 -1.0, %v530_v35  ;;  %vm553_vm10 = vcmp.eq.s32.totalorder %v543_v29, %v1012_v19 }
 0x455   :  { %v628_v45 = vadd.f32 %v627_v37, %v626_v41  ;;  %v556_v46 = vmul.f32 %v529_v40, %v529_v40  ;;  %v684_v47 = vadd.f32 -1.0, %v529_v40  ;;  %vm552_vm9 = vcmp.eq.s32.totalorder %v542_v32, %v1012_v19 }
 0x456   :  { %v597_v48 = vmul.f32 %v685_v43, %v685_v43  ;;  %v605_v49 = vmul.f32 0.005, %v557_v42  ;;  %v575_v55 = vsel %vm164_vm1, %v557_v42, 0.0 }
 0x457   :  { %v573_v50 = vsel %vm164_vm1, %v556_v46, 0.0  ;;  %v596_v51 = vmul.f32 %v684_v47, %v684_v47  ;;  %v604_v52 = vmul.f32 0.005, %v556_v46 }
 0x458   :  { %v613_v53 = vsub.f32 %v597_v48, %v605_v49  ;;  %v574_v54 = vadd.f32 %v573_v50, %v572_v8 }
 0x459   :  { %v612_v56 = vsub.f32 %v596_v51, %v604_v52  ;;  %v755_v57 = vpop.f32.mrb[6].mxu0 }
 0x45a   :  { %v532_v58 = vmul.f32 0.125, %v755_v57  ;;  %v508_v59 = vpop.f32.mrb[7].mxu0  ;;  %v576_v60 = vadd.f32 %v575_v55, %v574_v54  ;;  %v621_v61 = vsel %vm549_vm5, %v613_v53, 0.0 }
 0x45b   :  { %v620_v62 = vsel %vm548_vm6, %v612_v56, 0.0  ;;  %v531_v0 = vmul.f32 0.125, %v508_v59  ;;  %v631_v10 = vsel %vm164_vm1, %v621_v61, 0.0 }
 0x45c   :  { %v629_v1 = vsel %vm164_vm1, %v620_v62, 0.0  ;;  %v559_v2 = vmul.f32 %v532_v58, %v532_v58  ;;  %v687_v3 = vadd.f32 -1.0, %v532_v58 }
 0x45d   :  { %v630_v5 = vadd.f32 %v629_v1, %v628_v45  ;;  %v558_v6 = vmul.f32 %v531_v0, %v531_v0  ;;  %v686_v7 = vadd.f32 -1.0, %v531_v0 }
 0x45e   :  { %v599_v11 = vmul.f32 %v687_v3, %v687_v3  ;;  %v607_v12 = vmul.f32 0.005, %v559_v2  ;;  %v579_v20 = vsel %vm164_vm1, %v559_v2, 0.0 }
 0x45f   :  { %v577_v13 = vsel %vm164_vm1, %v558_v6, 0.0  ;;  %v598_v14 = vmul.f32 %v686_v7, %v686_v7  ;;  %v606_v15 = vmul.f32 0.005, %v558_v6  ;;  %v632_v16 = vadd.f32 %v631_v10, %v630_v5 }
 0x460   :  { %v615_v17 = vsub.f32 %v599_v11, %v607_v12  ;;  %v578_v18 = vadd.f32 %v577_v13, %v576_v60 }
 0x461   :  { %v614_v21 = vsub.f32 %v598_v14, %v606_v15  ;;  %v758_v22 = vpop.f32.mrb[2].mxu1 }
 0x462   :  { %v534_v23 = vmul.f32 0.125, %v758_v22  ;;  %v518_v24 = vpop.f32.mrb[3].mxu1  ;;  %v580_v25 = vadd.f32 %v579_v20, %v578_v18  ;;  %v623_v26 = vsel %vm551_vm7, %v615_v17, 0.0 }
 0x463   :  { %v622_v27 = vsel %vm550_vm8, %v614_v21, 0.0  ;;  %v533_v28 = vmul.f32 0.125, %v518_v24  ;;  %v635_v38 = vsel %vm164_vm1, %v623_v26, 0.0 }
 0x464   :  { %v633_v30 = vsel %vm164_vm1, %v622_v27, 0.0  ;;  %v561_v31 = vmul.f32 %v534_v23, %v534_v23  ;;  %v689_v8 = vadd.f32 -1.0, %v534_v23 }
 0x465   :  { %v560_v33 = vmul.f32 %v533_v28, %v533_v28  ;;  %v688_v34 = vadd.f32 -1.0, %v533_v28  ;;  %v634_v35 = vadd.f32 %v633_v30, %v632_v16 }
 0x466   :  { %v601_v36 = vmul.f32 %v689_v8, %v689_v8  ;;  %v609_v37 = vmul.f32 0.005, %v561_v31  ;;  %v583_v9 = vsel %vm164_vm1, %v561_v31, 0.0 }
 0x467   :  { %v581_v39 = vsel %vm164_vm1, %v560_v33, 0.0  ;;  %v600_v40 = vmul.f32 %v688_v34, %v688_v34  ;;  %v608_v41 = vmul.f32 0.005, %v560_v33  ;;  %v636_v42 = vadd.f32 %v635_v38, %v634_v35 }
 0x468   :  { %v617_v43 = vsub.f32 %v601_v36, %v609_v37  ;;  %v582_v44 = vadd.f32 %v581_v39, %v580_v25 }
 0x469   :  { %v616_v45 = vsub.f32 %v600_v40, %v608_v41 }
 0x46a   :  { %v584_v46 = vadd.f32 %v583_v9, %v582_v44  ;;  %v625_v48 = vsel %vm553_vm10, %v617_v43, 0.0 }
 0x46b   :  { %v624_v47 = vsel %vm552_vm9, %v616_v45, 0.0  ;;  %v639_v51 = vsel %vm164_vm1, %v625_v48, 0.0 }
 0x46c   :  { %585 = vadd.xlane.f32.xlu1 %v584_v46  ;;  %v637_v49 = vsel %vm164_vm1, %v624_v47, 0.0 }
 0x46d   :  { %v638_v50 = vadd.f32 %v637_v49, %v636_v42 }
 0x46f   :  { %v640_v52 = vadd.f32 %v639_v51, %v638_v50 }
 0x471   :  { %641 = vadd.xlane.f32.xlu0 %v640_v52 }
 0x4f9   :  { %v586_v53 = vpop.xlane.xlu1 %585 }
 0x4fa   :  { %v587_v54 = vrot.slane %v586_v53, 4 }
 0x4fc   :  { %v588_v55 = vadd.f32 %v587_v54, %v586_v53 }
 0x4fe   :  { %v589_v56 = vrot.slane %v588_v55, 2  ;;  %v642_v57 = vpop.xlane.xlu0 %641 }
 0x4ff   :  { %v643_v19 = vrot.slane %v642_v57, 4 }
 0x500   :  { %v590_v58 = vadd.f32 %v589_v56, %v588_v55 }
 0x501   :  { %v644_v59 = vadd.f32 %v643_v19, %v642_v57 }
 0x502   :  { %v591_v60 = vrot.slane %v590_v58, 1 }
 0x503   :  { %v645_v61 = vrot.slane %v644_v59, 2 }
 0x504   :  { %v592_v62 = vadd.f32 %v591_v60, %v590_v58 }
 0x505   :  { %v646_v63 = vadd.f32 %v645_v61, %v644_v59 }
 0x506   :  { %785 = vpush %v592_v62 }
 0x507   :  { %v647_v0 = vrot.slane %v646_v63, 1 }
 0x509   :  { %v648_v1 = vadd.f32 %v647_v0, %v646_v63 }
 0x50b   :  { %787 = vpush %v648_v1 }
 0x537   :  { %s786_s2 = spop %785 }
 0x538   :  { %s650_s3 = smul.f32 0.005, %s786_s2 }
 0x53c   :  { %s788_s7 = spop %787 }
 0x53d   :  { %s651_s8 = sadd.f32 %s788_s7, %s650_s3 }
 0x53f   :  { %653 = sst [smem:[#allocation8]] %s651_s8 }
 0x540   :  { %883 = shalt.err (!%p880_p12)
}
 0x541   :  { %s895_s16 = smov [#allocation8]  }
 0x542   :  { %661 = dma.smem_to_hbm %s895_s16, 16, %s1062_s5, [#allocation4]  }
 0x543   :  { %888 = dma.done.wait [#allocation4], 16  }
 0x544   :  { %889 = vsyncadd [#allocation4], 4294967280 }
 0x545   :  { %665 = sfence }
 0x546   :  { %666 = vsyncpa [#allocation3], 1 }
 0x547   :  { %667 = vsyncpa [#allocation6], 1 }
 0x548   :  { %668 = vsyncpa [#allocation4], 1 }

</bundles_post_ra>
